<compile_context>
chip_gen: v6e
topology: v6e:2x2x1
jax: 0.10.0
libtpu: 0.0.40
codegen_flags: <defaults>
</compile_context>

<pallas_src>
import math

import numpy as np
import jax
import jax.numpy as jnp
from jax.experimental import pallas as pl
from jax.experimental.pallas import tpu as pltpu


_LANES = 128
_SUBLANES = 32                 # int8 sublane tile; also a multiple of the f32 tile (8)
_E_MAX_BYTES = 2 << 20         # expansion matrix cap (pipeline double-buffers it)
_CONTRACT_MAX = 512            # max MXU contraction dim before expansion stops paying off
_TILE_BUDGET_BYTES = 6 << 20   # double-buffered in+out tile budget


def _round_up(x: int, m: int) -> int:
    return ((x + m - 1) // m) * m


def _pick_tile_rows(total_rows, in_row_bytes, out_row_bytes,
                    budget_bytes=_TILE_BUDGET_BYTES, max_rows=16384,
                    granularity=_SUBLANES):
    """Largest row-tile whose double-buffered in+out footprint fits the budget."""
    per_row = 2 * (in_row_bytes + out_row_bytes)
    tr = budget_bytes // max(per_row, 1)
    tr = min(max_rows, tr)
    tr = max(granularity, tr - tr % granularity)
    if total_rows <= tr:
        if total_rows > 8 * granularity:
            # >= 2 grid steps so ("parallel", ...) can shard across both
            # TensorCores on v7x; fewer/fatter steps otherwise.
            half = _round_up(-(-total_rows // 2), granularity)
            return min(half, tr)
        return total_rows            # single full-extent block (exact)
    return tr


# --------------------------------------------------------------------------
# Path 1: expansion matmul.  out_row = x_row @ E, where E is a static 0/1
# matrix that both repeats each B-wide bit group and folds the [::step]
# subsample.  Output row width W = k*rs_g*B is a multiple of 128 lanes.
# --------------------------------------------------------------------------
def _expansion_matrix(k, rs_g, st_g, B):
    cin, cout = k * st_g * B, k * rs_g * B
    e = np.zeros((cin, cout), np.float32)
    eye = np.eye(B, dtype=np.float32)
    for g in range(k):
        for p in range(rs_g):
            src = g * st_g + (p * st_g) // rs_g      # out[j] = bits[(j*st_g)//rs_g]
            dst = g * rs_g + p
            e[src * B:(src + 1) * B, dst * B:(dst + 1) * B] = eye
    return e


def _expand_matmul_kernel(x_ref, e_ref, o_ref):
    x = x_ref[...].astype(jnp.float32)               # single cast (int8/f32 -> f32)
    o_ref[...] = jnp.dot(x, e_ref[...],
                         preferred_element_type=jnp.float32).astype(o_ref.dtype)


def _stream_via_expansion(bits_in, rs_g, st_g, B, k, out_dtype):
    n = bits_in.shape[0]
    group = k * st_g
    n_pad = _round_up(n, group)
    if n_pad != n:
        # Bounded zero pad (< group rows); the wrapper slices the (small) excess
        # off after the free reshape.  When n % group == 0 there is no pad and
        # no post-kernel copy at all.
        bits_in = jnp.pad(bits_in, ((0, n_pad - n), (0, 0)))
    cin, w = group * B, k * rs_g * B                 # w is a multiple of 128
    rows = n_pad // group
    x2d = bits_in.reshape(rows, cin)                 # free row-major reinterpretation
    e = jnp.asarray(_expansion_matrix(k, rs_g, st_g, B))

    in_item = np.dtype(bits_in.dtype).itemsize
    out_item = np.dtype(out_dtype).itemsize
    tr = _pick_tile_rows(rows, cin * in_item, w * out_item)

    out = pl.pallas_call(
        _expand_matmul_kernel,
        out_shape=jax.ShapeDtypeStruct((rows, w), out_dtype),
        grid=(pl.cdiv(rows, tr),),                   # partial last block handled by Pallas
        in_specs=[pl.BlockSpec((tr, cin), lambda i: (i, 0)),
                  pl.BlockSpec((cin, w), lambda i: (0, 0))],   # E resident across steps
        out_specs=pl.BlockSpec((tr, w), lambda i: (i, 0)),
        compiler_params=pltpu.CompilerParams(dimension_semantics=("parallel",)),
    )(x2d, e)
    return out.reshape(-1, B)                        # (n_pad*rs_g//st_g, B), free


# --------------------------------------------------------------------------
# Path 2: repeat-concat.  For wide chunks (r*B >= 128) one concatenate builds
# the full-width block value (lane replication is VPU/XLU work, idle here) and
# a single unmasked store writes it.  The repeat dimension is gridded so very
# large repeat factors never blow VMEM or compile time.
# --------------------------------------------------------------------------
def _make_repeat_concat_kernel(r_blk):
    def kernel(x_ref, o_ref):
        x = x_ref[...].astype(o_ref.dtype)           # single cast
        o_ref[...] = x if r_blk == 1 else jnp.concatenate([x] * r_blk, axis=1)
    return kernel


def _stream_via_repeat_concat(bits_in, r, B, out_dtype):
    n = bits_in.shape[0]
    in_item = np.dtype(bits_in.dtype).itemsize
    out_item = np.dtype(out_dtype).itemsize
    # Largest divisor of r (<= 64 replicas / store) keeping the block row <= 1 MiB.
    r_blk = 1
    for d in range(1, min(r, 64) + 1):
        if r % d == 0 and d * B * out_item <= (1 << 20):
            r_blk = d
    tr = _pick_tile_rows(n, B * in_item, r_blk * B * out_item)

    out = pl.pallas_call(
        _make_repeat_concat_kernel(r_blk),
        out_shape=jax.ShapeDtypeStruct((n, r * B), out_dtype),
        grid=(pl.cdiv(n, tr), r // r_blk),           # width axis inner: input stays resident
        in_specs=[pl.BlockSpec((tr, B), lambda i, j: (i, 0))],
        out_specs=pl.BlockSpec((tr, r_blk * B), lambda i, j: (i, j)),
        compiler_params=pltpu.CompilerParams(
            dimension_semantics=("parallel", "arbitrary")),
    )(bits_in)
    return out.reshape(-1, B)                        # (n*r, B) exact, free


# --------------------------------------------------------------------------
# Wrapper: BitStreamGenerator.forward
# --------------------------------------------------------------------------
def bitstream_generate(
    bits,
    bitrate: float = 40e9,
    samplerate: float = 160e9,
    cutoff_frequency=None,
    filter_order: int = 1,
    seed=None,
    dtype=jnp.float32,            # pass jnp.bfloat16 to halve HBM write traffic
):
    """Pallas implementation of BitStreamGenerator.forward (no low-pass filter)."""
    bitrate = float(bitrate)
    samplerate = float(samplerate)

    rc = 1
    temp_samplerate = samplerate
    if cutoff_frequency is not None:
        # TODO(synk): scipy.signal.butter + lfilter is a sequential IIR recurrence
        # along time with no clean Pallas equivalent; filtered path not implemented.
        raise NotImplementedError("cutoff_frequency path (butter + lfilter) not implemented")

    rates_gcd = np.gcd(int(temp_samplerate + 0.5), int(bitrate + 0.5))
    rs = int(temp_samplerate + 0.5) // rates_gcd
    rb = int(bitrate + 0.5) // rates_gcd
    step = rb * rc

    # --- bits input handling (host glue, same as the module) ---
    if hasattr(bits, "ndim") and getattr(bits, "ndim", None) == 0:
        bits = int(bits)
    if isinstance(bits, int):
        rng = np.random.RandomState(seed=None if seed is None else int(seed + 0.5))
        bits = rng.rand(bits) > 0.5
    bits = jnp.asarray(bits)
    squeeze_out = bits.ndim == 1
    if squeeze_out:
        bits = bits[:, None]
    assert bits.ndim == 2, "expected bits of shape (N_bits,) or (N_bits, B_streams)"
    n, B = bits.shape

    # out[j] = bits[(j*step)//rs] == bits[(j*st_g)//rs_g]
    gg = math.gcd(rs, step)
    rs_g, st_g = rs // gg, step // gg
    m_exact = -(-(n * rs_g) // st_g)                 # ceil(n*rs/step)

    # Narrow input staging: bool -> int8 (1 B/elem); cast once in-kernel.
    if bits.dtype == jnp.bool_:
        bits_in = bits.astype(jnp.int8)
    elif bits.dtype in (np.dtype("int8"), np.dtype("uint8")):
        bits_in = bits
    else:
        bits_in = bits.astype(jnp.float32)           # arbitrary numeric bits, exact in f32

    # --- path selection ---
    chunk_out = rs_g * B
    k0 = _LANES // math.gcd(chunk_out, _LANES)       # minimal k with k*chunk_out % 128 == 0

    def e_bytes(kk):
        return (kk * st_g * B) * (kk * rs_g * B) * 4

    k = k0
    while k * st_g * B < _LANES and e_bytes(2 * k) <= _E_MAX_BYTES:
        k *= 2                                       # widen the input row toward 128 lanes

    expansion_ok = e_bytes(k) <= _E_MAX_BYTES and (
        k * st_g * B <= _CONTRACT_MAX or chunk_out < _LANES)

    post_stride = 1
    if st_g == 1 and (chunk_out >= _LANES or rs_g == 1):
        stream2d = _stream_via_repeat_concat(bits_in, rs_g, B, dtype)
    elif expansion_ok:
        stream2d = _stream_via_expansion(bits_in, rs_g, st_g, B, k, dtype)
    elif st_g == 1:
        stream2d = _stream_via_repeat_concat(bits_in, rs_g, B, dtype)
    else:
        # TODO(synk): very wide, non-divisible-rate case; subsample done with an
        # XLA strided slice instead of being folded into the kernel.
        stream2d = _stream_via_repeat_concat(bits_in, rs_g, B, dtype)
        post_stride = st_g

    if post_stride != 1:
        stream2d = stream2d[::post_stride]
    if stream2d.shape[0] != m_exact:                 # only when padding was needed
        stream2d = stream2d[:m_exact]

    return stream2d[:, 0] if squeeze_out else stream2d


if __name__ == "__main__":
    rs_default = 4    # 40 Gb/s bits at 160 GS/s -> rs = 4, rb = rc = 1

    # 1) 16 bits x 8 streams (expansion path, no padding, single block).
    bits1 = jax.random.uniform(jax.random.PRNGKey(0), (16, 8)) > 0.5
    out1 = jax.block_until_ready(bitstream_generate(bits1))
    b1 = np.asarray(bits1)
    ref1 = np.stack([b1] * rs_default, 1).reshape(-1, 8).astype(np.float32)
    assert out1.shape == ref1.shape, (out1.shape, ref1.shape)
    np.testing.assert_array_equal(np.asarray(out1), ref1)

    # 2) 1-D sequence, length not a multiple of the packing factor (pad + exact slice).
    bits2 = jax.random.uniform(jax.random.PRNGKey(0), (50,)) > 0.5
    out2 = jax.block_until_ready(bitstream_generate(bits2))
    b2 = np.asarray(bits2)
    ref2 = np.stack([b2] * rs_default, 1).reshape(-1).astype(np.float32)
    assert out2.shape == ref2.shape, (out2.shape, ref2.shape)
    np.testing.assert_array_equal(np.asarray(out2), ref2)

    # 3) many wide streams -> repeat-concat path (already lane-dense, no matmul).
    bits3 = jax.random.uniform(jax.random.PRNGKey(1), (24, 640)) > 0.5
    out3 = jax.block_until_ready(bitstream_generate(bits3))
    b3 = np.asarray(bits3)
    ref3 = np.stack([b3] * rs_default, 1).reshape(-1, 640).astype(np.float32)
    assert out3.shape == ref3.shape, (out3.shape, ref3.shape)
    np.testing.assert_array_equal(np.asarray(out3), ref3)

    # 4) non-divisible rates (rs=4, rb=3): subsample folded into the expansion matrix.
    bits4 = jax.random.uniform(jax.random.PRNGKey(2), (200,)) > 0.5
    out4 = jax.block_until_ready(bitstream_generate(bits4, bitrate=3e9, samplerate=4e9))
    b4 = np.asarray(bits4)
    ref4 = np.stack([b4] * 4, 1).reshape(-1)[::3].astype(np.float32)
    assert out4.shape == ref4.shape, (out4.shape, ref4.shape)
    np.testing.assert_array_equal(np.asarray(out4), ref4)

    # 5) larger input: multi-step grid with a partial last row-block, zero
    #    post-kernel copies (N is a multiple of the packing factor).
    bits5 = jax.random.uniform(jax.random.PRNGKey(3), (10000, 8)) > 0.5
    out5 = jax.block_until_ready(bitstream_generate(bits5))
    b5 = np.asarray(bits5)
    ref5 = np.stack([b5] * rs_default, 1).reshape(-1, 8).astype(np.float32)
    assert out5.shape == ref5.shape, (out5.shape, ref5.shape)
    np.testing.assert_array_equal(np.asarray(out5), ref5)

    print("KERNEL_OK")
</pallas_src>

<mosaic_0001>
module attributes {stable_mosaic.version = 11 : i64} {
  func.func @_expand_matmul_kernel(%arg0: i32, %arg1: memref<1x128xi8, #tpu.memory_space<vmem>>, %arg2: memref<128x512xf32, #tpu.memory_space<vmem>>, %arg3: memref<1x512xf32, #tpu.memory_space<vmem>>) attributes {dimension_semantics = [#tpu.dimension_semantics<parallel>], iteration_bounds = array<i64: -9223372036854775808>, scalar_prefetch = 0 : i64, scratch_operands = 0 : i64, tpu.core_type = #tpu.core_type<tc>, window_params = [{transform_indices = @transform_0, window_bounds = array<i64: 1, 128>}, {pipeline_mode = #tpu.pipeline_mode<synchronous>, transform_indices = @transform_1, window_bounds = array<i64: 128, 512>}, {transform_indices = @transform_2, window_bounds = array<i64: 1, 512>}]} {
    %c0 = arith.constant 0 : index
    %c0_0 = arith.constant 0 : index
    %0 = vector.load %arg1[%c0, %c0_0] : memref<1x128xi8, #tpu.memory_space<vmem>>, vector<1x128xi8>
    %1 = arith.sitofp %0 : vector<1x128xi8> to vector<1x128xf32>
    %c0_1 = arith.constant 0 : index
    %c0_2 = arith.constant 0 : index
    %2 = vector.load %arg2[%c0_1, %c0_2] : memref<128x512xf32, #tpu.memory_space<vmem>>, vector<128x512xf32>
    %cst = arith.constant dense<0.000000e+00> : vector<1x512xf32>
    %3 = tpu.matmul %1, %2, %cst {dimension_numbers = #tpu.dot_dimension_numbers<[1], [0], [0], [1], [0, 0, 1, 1], [], []>} : vector<1x128xf32>, vector<128x512xf32>, vector<1x512xf32> -> vector<1x512xf32>
    %c0_3 = arith.constant 0 : index
    %c0_4 = arith.constant 0 : index
    %4 = vector.load %arg3[%c0_3, %c0_4] : memref<1x512xf32, #tpu.memory_space<vmem>>, vector<1x512xf32>
    tpu.vector_store %arg3[%c0_3, %c0_4], %3 {strides = array<i32>} : memref<1x512xf32, #tpu.memory_space<vmem>>, vector<1x512xf32>,
    return
  }
  func.func @transform_0(%arg0: i32) -> (i32, i32) {
    %c0_i32 = arith.constant 0 : i32
    %c0_i32_0 = arith.constant 0 : i32
    return %arg0, %c0_i32 : i32, i32
  }
  func.func @transform_1(%arg0: i32) -> (i32, i32) {
    %c0_i32 = arith.constant 0 : i32
    %c0_i32_0 = arith.constant 0 : i32
    %c0_i32_1 = arith.constant 0 : i32
    return %c0_i32, %c0_i32_0 : i32, i32
  }
  func.func @transform_2(%arg0: i32) -> (i32, i32) {
    %c0_i32 = arith.constant 0 : i32
    %c0_i32_0 = arith.constant 0 : i32
    return %arg0, %c0_i32 : i32, i32
  }
}

</mosaic_0001>

<bundles_post_ra>
// kernel: tpu_custom_call.1
= control target key start
LH: loop header
LB: loop body
LE: loop exit
PB: predicated region body
PF: predicated region fallthrough
CT: control target
= control target key end

     0   :  { %8 = vsyncpa [#allocation3], 0  ;;  %s927_s0 = inlined_call_operand.<no memory space> [shape: s32[], index: 0, kind: input, shape index: {}]   ;;  %s928_s1 = inlined_call_operand.hbm [shape: s8[1,128], index: 1, kind: input, shape index: {}]   ;;  %s929_s2 = inlined_call_operand.hbm [shape: f32[128,512], index: 2, kind: input, shape index: {}]   ;;  %s930_s3 = inlined_call_operand.hbm [shape: f32[1,512], index: 3, kind: output, shape index: {}]  }
   0x1   :  { %10 = vsyncpa [#allocation3 + $0x1], 0 }
   0x2   :  { %11 = vsyncpa [#allocation6], 0 }
   0x3   :  { %12 = vsyncpa [#allocation4], 0 }
   0x4   :  { %14 = vsyncpa [#allocation4 + $0x1], 0  ;;  %s15_s14 = sadd.s32 2, %s927_s0 }
   0x5   :  { %p518_p0 = scmp.le.s32.totalorder %s15_s14, 0 }
   0x6   :  { %s755_s17 = smov (!%p518_p0), 0   ;;  %s757_s18 = smov (!%p518_p0), 0  }
   0x7   :  { %497 = sbr.rel (%p518_p0) target bundleno = 344 (0x158), region = 71  ;;  %s759_s19 = smov (!%p518_p0), 0  }
   0x8   :  { %s761_s20 = smov (!%p518_p0), 0  }
   0xc LB: > { %s776_s21 = sadd.s32 4294967295, %s719_s20   ;;  %s520_s22 = sadd.s32 4294967294, %s719_s20   ;;  %s719_s20 = sphi %s761_s20, %s951_s20   ;;  %s715_s19 = sphi %s759_s19, %s950_s19   ;;  %s711_s18 = sphi %s757_s18, %s949_s18   ;;  %s707_s17 = sphi %s755_s17, %s948_s17  }
   0xd   : > { %p43_p1 = scmp.ne.s32.totalorder %s711_s18, %s707_s17  ;;  %p931_p2 = scmp.eq.s32.totalorder %s776_s21, 0 }
   0xe   : > { %s521_s25 = sadd.s32 4294967295, %s927_s0  ;;  %p523_p3 = scmp.ge.s32.totalorder %s719_s20, 1 }
   0xf   : > { %p788_p4 = por %p931_p2, %p43_p1  ;;  %p793_p5 = scmp.eq.s32.totalorder %s776_s21, %s521_s25 }
  0x10   : > { %p101_p6 = scmp.eq.s32.totalorder %s520_s22, %s521_s25  ;;  %s108_s30 = sadd.s32 1, %s927_s0 }
  0x11   : > { %s935_s26 = scalar_select %p788_p4, 1, 0 }
  0x12   : > { %p109_p7 = scmp.lt.s32.totalorder %s719_s20, %s108_s30  ;;  %p801_p8 = por %p101_p6, %p43_p1 }
  0x13   : > { %s721_s6 = smov [#allocation5]   ;;  %s818_s9 = sadd.s32 1, %s719_s20  }
  0x14   : > { %s937_s4 = scalar_select %p801_p8, 1, 0 }
  0x15   : > { %p805_p9 = pnand %p523_p3, %p109_p7  ;;  %s121_s7 = sshll.u32 %s721_s6, 4  ;;  %s122_s7 = int_to_ptr.vmem [resolvable:$true] %s121_s7 }
  0x16   : > { %s28_s10 = sadd.s32 1, %s715_s19  ;;  %s25_s11 = ssub.s32 %s719_s20, %s818_s9 }
  0x17   : > { %s938_s5 = scalar_select %p805_p9, 1, 0 }
  0x18   : > { %p544_p10 = pneg %p805_p9  ;;  %s608_s12 = scalar_lea.vmem %s122_s7, 8192 }
  0x19   : > { %p609_p13 = scmp.ne.s32.totalorder %s122_s7, %s608_s12  ;;  %p616_p3 = scmp.lt.s32.totalorder %s122_s7, %s122_s7 }
  0x1a   : > { %p813_p11 = pnand %p544_p10, %p931_p2  ;;  %p617_p6 = scmp.lt.s32.totalorder %s608_s12, %s608_s12 }
  0x1c   : > { %p599_p12 = pneg %p813_p11  ;;  %p618_p7 = por %p617_p6, %p616_p3 }
  0x1e   : > { %p611_p0 = pnand %p609_p13, %p599_p12 }
  0x20   : > { %p612_p1 = pneg %p611_p0 }
  0x22   : > { %p619_p8 = pnand %p618_p7, %p612_p1 }
  0x24   : > { %622 = shalt.err (!%p619_p8)
}
  0x25   : > { %s722_s13 = smov 512   ;;  %s723_s15 = smov 32  }
  0x26   : > { %547 = dma.hbm_to_vmem [thread:$0]  (!%p813_p11), %s929_s2, 8192, %s122_s7, [#allocation6], %s722_s13, %s722_s13, %s723_s15  }
  0x27   : > { %p26_p10 = scmp.eq.s32.totalorder %s25_s11, 0  ;;  %p36_p12 = scmp.ne.s32.totalorder %s715_s19, %s711_s18 }
  0x28   : > { %p37_p13 = scmp.eq.s32.totalorder %s719_s20, 0  ;;  %p557_p8 = scmp.lt.s32.totalorder %s719_s20, %s927_s0 }
  0x29   : > { %s838_s25 = scalar_select %p26_p10, %s715_s19, %s28_s10  }
  0x2a   : > { %p38_p0 = por %p37_p13, %p36_p12  ;;  %p842_p1 = por %p793_p5, %p36_p12 }
  0x2b   : > { %s135_s29 = sand.u32 1, %s715_s19   ;;  %s526_s30 = sshll.u32 %s719_s20, 4 }
  0x2c   : > { %s940_s28 = scalar_select %p842_p1, 1, 0 }
  0x2d   : > { %s851_s7 = scalar_lea.hbm %s928_s1, %s526_s30  ;;  %s138_s11 = scalar_lea.vmem [#allocation2], %s135_s29 }
  0x2e   : > { %s145_s12 = sshll.u32 %s138_s11, 4  ;;  %p853_p11 = pnand %p557_p8, %p38_p0  ;;  %s146_s12 = int_to_ptr.vmem [resolvable:$true] %s145_s12 }
  0x2f   : > { %s136_s27 = scalar_lea.sflag [#allocation3], %s135_s29  ;;  %s623_s13 = scalar_lea.hbm %s851_s7, 16 }
  0x30   : > { %p624_p5 = scmp.ne.s32.totalorder %s851_s7, %s623_s13  ;;  %p625_p3 = pneg %p853_p11 }
  0x31   : > { %s628_s22 = scalar_lea.hbm %s928_s1, 16  ;;  %p629_p10 = scmp.lt.s32.totalorder %s851_s7, %s928_s1 }
  0x32   : > { %p626_p6 = pnand %p625_p3, %p624_p5  ;;  %p630_p12 = scmp.lt.s32.totalorder %s628_s22, %s623_s13 }
  0x34   : > { %p627_p7 = pneg %p626_p6  ;;  %p631_p13 = por %p630_p12, %p629_p10 }
  0x36   : > { %p632_p8 = pnand %p631_p13, %p627_p7 }
  0x38   : > { %635 = shalt.err (!%p632_p8)
}
  0x39   : > { %s636_s30 = scalar_lea.vmem %s146_s12, 16  ;;  %s724_s29 = smov [#allocation2]  }
  0x3a   : > { %p637_p0 = scmp.ne.s32.totalorder %s146_s12, %s636_s30  ;;  %s641_s6 = sshll.u32 %s724_s29, 4  ;;  %s642_s6 = int_to_ptr.vmem [resolvable:$false] %s641_s6 }
  0x3b   : > { %s643_s8 = scalar_lea.vmem %s642_s6, 32  ;;  %p644_p5 = scmp.lt.s32.totalorder %s146_s12, %s642_s6 }
  0x3c   : > { %p639_p2 = pnand %p637_p0, %p625_p3  ;;  %p645_p6 = scmp.lt.s32.totalorder %s643_s8, %s636_s30 }
  0x3e   : > { %p640_p1 = pneg %p639_p2  ;;  %p646_p4 = por %p645_p6, %p644_p5 }
  0x40   : > { %p647_p9 = pnand %p646_p4, %p640_p1 }
  0x42   : > { %650 = shalt.err (!%p647_p9)
}
  0x43   : > { %551 = dma.hbm_to_vmem [thread:$0]  (!%p853_p11), %s851_s7, 16, %s146_s12, %s136_s27  }
  0x44   : > { %p942_p7 = scmp.ne.s32.totalorder %s938_s5, 0 }
  0x45   : > { %s874_s11 = sand.u32 (!%p942_p7), 1, %s711_s18   ;;  %p943_p2 = scmp.ne.s32.totalorder (!%p942_p7), %s935_s26, 0 }
  0x46   : > { %155 = sbr.rel (%p942_p7) target bundleno = 329 (0x149), region = 28  ;;  %s158_s13 = scalar_lea.sflag (!%p942_p7), [#allocation3], %s874_s11 }
  0x47   : > { %s160_s15 = scalar_lea.vmem (!%p942_p7), [#allocation2], %s874_s11 }
  0x4b   : > { %694 = dma.done.wait (%p943_p2), %s158_s13, 16  }
  0x4c   : > { %696 = vsyncadd (%p943_p2), %s158_s13, 4294967280  ;;  %p944_p4 = scmp.eq.s32.totalorder %s776_s21, 0 }
  0x4e   : > { %698 = dma.done.wait (%p944_p4), [#allocation6], 8192   ;;  %p945_p9 = pmov %p944_p4 }
  0x4f   : > { %v725_v0 = vmov 0.0   ;;  %v248_v1 = vld [vmem:[#allocation5 + $0x1e8] sm:$0xff]  ;;  %v250_v2 = vld [vmem:[#allocation5 + $0x1f8] sm:$0xff]  ;;  %v247_v3 = vld [vmem:[#allocation5 + $0x1e0] sm:$0xff]  ;;  %s529_s26 = sshll.u32 %s874_s11, 2  ;;  %s535_s5 = sshll.u32 %s776_s21, 6 }
  0x50   : > { %700 = vsyncadd (%p945_p9), [#allocation6], 4294959104  ;;  %315 = vmatprep.mubr.f32.mxu0 %v725_v0  ;;  %386 = vmatprep.mubr.f32.mxu1 %v725_v0  ;;  %v249_v4 = vld [vmem:[#allocation5 + $0x1f0] sm:$0xff]  ;;  %v244_v5 = vld [vmem:[#allocation5 + $0x1c8] sm:$0xff]  ;;  %s183_s7 = scalar_lea.vmem [#allocation7], %s529_s26  ;;  %s440_s16 = scalar_lea.hbm %s930_s3, %s535_s5 }
  0x51   : > { %251 = vmatprep.subr.mxu0 %v248_v1  ;;  %322 = vmatprep.subr.mxu1 %v250_v2  ;;  %v246_v6 = vld [vmem:[#allocation5 + $0x1d8] sm:$0xff]  ;;  %v243_v7 = vld [vmem:[#allocation5 + $0x1c0] sm:$0xff]  ;;  %v245_v8 = vld [vmem:[#allocation5 + $0x1d0] sm:$0xff]  ;;  %s442_s12 = sshll.u32 %s183_s7, 4  ;;  %s428_s22 = scalar_lea.sflag [#allocation4], %s874_s11  ;;  %s443_s12 = int_to_ptr.vmem [resolvable:$true] %s442_s12 }
  0x52   : > { %252 = vmatpush1.msra.mxu0 %v247_v3  ;;  %323 = vmatpush1.msra.mxu1 %v249_v4  ;;  %v240_v9 = vld [vmem:[#allocation5 + $0x1a8] sm:$0xff]  ;;  %v242_v10 = vld [vmem:[#allocation5 + $0x1b8] sm:$0xff]  ;;  %v239_v11 = vld [vmem:[#allocation5 + $0x1a0] sm:$0xff]  ;;  %v726_v4 = vmov 1966171168   ;;  %s651_s23 = scalar_lea.vmem %s443_s12, 64 }
  0x53   : > { %253 = vmatprep.subr.mxu0 %v244_v5  ;;  %324 = vmatprep.subr.mxu1 %v246_v6  ;;  %v241_v12 = vld [vmem:[#allocation5 + $0x1b0] sm:$0xff]  ;;  %v236_v13 = vld [vmem:[#allocation5 + $0x188] sm:$0xff]  ;;  %v238_v14 = vld [vmem:[#allocation5 + $0x198] sm:$0xff]  ;;  %v400_v5 = vunpack.c.l.s4 %v726_v4  ;;  %v402_v6 = vlaneseq  ;;  %p652_p1 = scmp.ne.s32.totalorder %s443_s12, %s651_s23  ;;  %p946_p11 = scmp.ne.s32.totalorder %s940_s28, 0 }
  0x54   : > { %254 = vmatpush1.msra.mxu0 %v243_v7  ;;  %325 = vmatpush1.msra.mxu1 %v245_v8  ;;  %v235_v15 = vld [vmem:[#allocation5 + $0x180] sm:$0xff]  ;;  %v237_v16 = vld [vmem:[#allocation5 + $0x190] sm:$0xff]  ;;  %v232_v17 = vld [vmem:[#allocation5 + $0x168] sm:$0xff]  ;;  %s727_s24 = smov [#allocation7]  }
  0x55   : > { %255 = vmatprep.subr.mxu0 %v240_v9  ;;  %326 = vmatprep.subr.mxu1 %v242_v10  ;;  %v234_v18 = vld [vmem:[#allocation5 + $0x178] sm:$0xff]  ;;  %v231_v19 = vld [vmem:[#allocation5 + $0x160] sm:$0xff]  ;;  %v233_v20 = vld [vmem:[#allocation5 + $0x170] sm:$0xff]  ;;  %v401_v7 = vunpack.c.0.s8 %v400_v5  ;;  %v403_v8 = vshrl.u32 %v402_v6, 7  ;;  %vm424_vm0 = vcmp.lt.s32.totalorder %v402_v6, 512  ;;  %p653_p3 = pnand %p652_p1, %p946_p11  ;;  %s655_s30 = sshll.u32 %s727_s24, 4  ;;  %s656_s30 = int_to_ptr.vmem [resolvable:$false] %s655_s30 }
  0x56   : > { %256 = vmatpush1.msra.mxu0 %v239_v11  ;;  %327 = vmatpush1.msra.mxu1 %v241_v12  ;;  %v228_v21 = vld [vmem:[#allocation5 + $0x148] sm:$0xff]  ;;  %v230_v22 = vld [vmem:[#allocation5 + $0x158] sm:$0xff]  ;;  %v227_v23 = vld [vmem:[#allocation5 + $0x140] sm:$0xff]  ;;  %s657_s21 = scalar_lea.vmem %s656_s30, 128  ;;  %p658_p12 = scmp.lt.s32.totalorder %s443_s12, %s656_s30 }
  0x57   : > { %257 = vmatprep.subr.mxu0 %v236_v13  ;;  %328 = vmatprep.subr.mxu1 %v238_v14  ;;  %v229_v24 = vld [vmem:[#allocation5 + $0x150] sm:$0xff]  ;;  %v224_v25 = vld [vmem:[#allocation5 + $0x128] sm:$0xff]  ;;  %v226_v26 = vld [vmem:[#allocation5 + $0x138] sm:$0xff]  ;;  %v404_v11 = vsub.s32 %v401_v7, %v403_v8  ;;  %p654_p10 = pneg %p653_p3  ;;  %p659_p13 = scmp.lt.s32.totalorder %s657_s21, %s651_s23 }
  0x58   : > { %258 = vmatpush1.msra.mxu0 %v235_v15  ;;  %329 = vmatpush1.msra.mxu1 %v237_v16  ;;  %v223_v27 = vld [vmem:[#allocation5 + $0x120] sm:$0xff]  ;;  %v225_v28 = vld [vmem:[#allocation5 + $0x130] sm:$0xff]  ;;  %v220_v29 = vld [vmem:[#allocation5 + $0x108] sm:$0xff] }
  0x59   : > { %259 = vmatprep.subr.mxu0 %v232_v17  ;;  %330 = vmatprep.subr.mxu1 %v234_v18  ;;  %v222_v30 = vld [vmem:[#allocation5 + $0x118] sm:$0xff]  ;;  %v219_v31 = vld [vmem:[#allocation5 + $0x100] sm:$0xff]  ;;  %v221_v32 = vld [vmem:[#allocation5 + $0x110] sm:$0xff]  ;;  %p660_p8 = por %p659_p13, %p658_p12 }
  0x5a   : > { %260 = vmatpush1.msra.mxu0 %v231_v19  ;;  %331 = vmatpush1.msra.mxu1 %v233_v20  ;;  %v216_v33 = vld [vmem:[#allocation5 + $0xe8] sm:$0xff]  ;;  %v218_v34 = vld [vmem:[#allocation5 + $0xf8] sm:$0xff]  ;;  %v215_v35 = vld [vmem:[#allocation5 + $0xe0] sm:$0xff] }
  0x5b   : > { %261 = vmatprep.subr.mxu0 %v228_v21  ;;  %332 = vmatprep.subr.mxu1 %v230_v22  ;;  %v217_v36 = vld [vmem:[#allocation5 + $0xf0] sm:$0xff]  ;;  %v212_v37 = vld [vmem:[#allocation5 + $0xc8] sm:$0xff]  ;;  %v214_v38 = vld [vmem:[#allocation5 + $0xd8] sm:$0xff]  ;;  %p661_p0 = pnand %p660_p8, %p654_p10 }
  0x5c   : > { %262 = vmatpush1.msra.mxu0 %v227_v23  ;;  %333 = vmatpush1.msra.mxu1 %v229_v24  ;;  %v211_v39 = vld [vmem:[#allocation5 + $0xc0] sm:$0xff]  ;;  %v213_v40 = vld [vmem:[#allocation5 + $0xd0] sm:$0xff]  ;;  %v208_v41 = vld [vmem:[#allocation5 + $0xa8] sm:$0xff] }
  0x5d   : > { %263 = vmatprep.subr.mxu0 %v224_v25  ;;  %334 = vmatprep.subr.mxu1 %v226_v26  ;;  %v210_v42 = vld [vmem:[#allocation5 + $0xb8] sm:$0xff]  ;;  %v207_v43 = vld [vmem:[#allocation5 + $0xa0] sm:$0xff]  ;;  %v209_v44 = vld [vmem:[#allocation5 + $0xb0] sm:$0xff] }
  0x5e   : > { %264 = vmatpush1.msra.mxu0 %v223_v27  ;;  %335 = vmatpush1.msra.mxu1 %v225_v28  ;;  %v204_v45 = vld [vmem:[#allocation5 + $0x88] sm:$0xff]  ;;  %v206_v46 = vld [vmem:[#allocation5 + $0x98] sm:$0xff]  ;;  %v203_v47 = vld [vmem:[#allocation5 + $0x80] sm:$0xff] }
  0x5f   : > { %265 = vmatprep.subr.mxu0 %v220_v29  ;;  %336 = vmatprep.subr.mxu1 %v222_v30  ;;  %v205_v48 = vld [vmem:[#allocation5 + $0x90] sm:$0xff]  ;;  %v200_v49 = vld [vmem:[#allocation5 + $0x68] sm:$0xff]  ;;  %v202_v50 = vld [vmem:[#allocation5 + $0x78] sm:$0xff] }
  0x60   : > { %266 = vmatpush1.msra.mxu0 %v219_v31  ;;  %337 = vmatpush1.msra.mxu1 %v221_v32  ;;  %v184_v51 = vld [vmem:[%s160_s15] sm:$0x1]  ;;  %v199_v52 = vld [vmem:[#allocation5 + $0x60] sm:$0xff]  ;;  %v201_v53 = vld [vmem:[#allocation5 + $0x70] sm:$0xff] }
  0x61   : > { %267 = vmatprep.subr.mxu0 %v216_v33  ;;  %338 = vmatprep.subr.mxu1 %v218_v34  ;;  %v196_v54 = vld [vmem:[#allocation5 + $0x48] sm:$0xff]  ;;  %v198_v55 = vld [vmem:[#allocation5 + $0x58] sm:$0xff]  ;;  %v195_v56 = vld [vmem:[#allocation5 + $0x40] sm:$0xff]  ;;  %v185_v58 = vunpack.c.0.s8 %v184_v51 }
  0x62   : > { %268 = vmatpush1.msra.mxu0 %v215_v35  ;;  %339 = vmatpush1.msra.mxu1 %v217_v36  ;;  %v197_v57 = vld [vmem:[#allocation5 + $0x50] sm:$0xff]  ;;  %v192_v59 = vld [vmem:[#allocation5 + $0x28] sm:$0xff]  ;;  %v194_v60 = vld [vmem:[#allocation5 + $0x38] sm:$0xff] }
  0x63   : > { %269 = vmatprep.subr.mxu0 %v212_v37  ;;  %340 = vmatprep.subr.mxu1 %v214_v38  ;;  %v191_v61 = vld [vmem:[#allocation5 + $0x20] sm:$0xff]  ;;  %v193_v62 = vld [vmem:[#allocation5 + $0x30] sm:$0xff]  ;;  %v188_v63 = vld [vmem:[#allocation5 + $0x8] sm:$0xff]  ;;  %v186_v3 = vcvt.s32.f32 %v185_v58 }
  0x64   : > { %270 = vmatpush1.msra.mxu0 %v211_v39  ;;  %341 = vmatpush1.msra.mxu1 %v213_v40  ;;  %v190_v0 = vld [vmem:[#allocation5 + $0x18] sm:$0xff]  ;;  %v187_v1 = vld [vmem:[#allocation5] sm:$0xff]  ;;  %v189_v2 = vld [vmem:[#allocation5 + $0x10] sm:$0xff] }
  0x65   : > { %271 = vmatprep.subr.mxu0 %v208_v41  ;;  %342 = vmatprep.subr.mxu1 %v210_v42 }
  0x66   : > { %272 = vmatpush1.msra.mxu0 %v207_v43  ;;  %343 = vmatpush1.msra.mxu1 %v209_v44 }
  0x67   : > { %273 = vmatprep.subr.mxu0 %v204_v45  ;;  %344 = vmatprep.subr.mxu1 %v206_v46 }
  0x68   : > { %274 = vmatpush1.msra.mxu0 %v203_v47  ;;  %345 = vmatpush1.msra.mxu1 %v205_v48 }
  0x69   : > { %275 = vmatprep.subr.mxu0 %v200_v49  ;;  %346 = vmatprep.subr.mxu1 %v202_v50 }
  0x6a   : > { %276 = vmatpush1.msra.mxu0 %v199_v52  ;;  %347 = vmatpush1.msra.mxu1 %v201_v53 }
  0x6b   : > { %277 = vmatprep.subr.mxu0 %v196_v54  ;;  %348 = vmatprep.subr.mxu1 %v198_v55 }
  0x6c   : > { %278 = vmatpush1.msra.mxu0 %v195_v56  ;;  %349 = vmatpush1.msra.mxu1 %v197_v57 }
  0x6d   : > { %279 = vmatprep.subr.mxu0 %v192_v59  ;;  %350 = vmatprep.subr.mxu1 %v194_v60 }
  0x6e   : > { %280 = vmatpush1.msra.mxu0 %v191_v61  ;;  %351 = vmatpush1.msra.mxu1 %v193_v62 }
  0x6f   : > { %281 = vmatprep.subr.mxu0 %v188_v63  ;;  %352 = vmatprep.subr.mxu1 %v190_v0 }
  0x70   : > { %282 = vmatpush1.msra.mxu0 %v187_v1  ;;  %353 = vmatpush1.msra.mxu1 %v189_v2 }
  0x71   : > { %316 = vmatmul.mubr.f32.vlgmr.msra.gmra.mxu0 %v186_v3  ;;  %387 = vmatmul.mubr.f32.vlgmr.msra.gmra.mxu1 %v186_v3 }
 0x131   : > { %v317_v9 = vpop.f32.mrf.mxu0  ;;  %v388_v10 = vpop.f32.mrf.mxu1 }
 0x133   : > { %v319_v12 = vpop.f32.mrf.mxu0  ;;  %v390_v13 = vpop.f32.mrf.mxu1 }
 0x134   : > { %v397_v14 = vcombine.low %v317_v9, %v319_v12  ;;  %v398_v15 = vcombine.low %v388_v10, %v390_v13 }
 0x136   : > { %v405_v16 = vrot.slane %v397_v14, %v404_v11  ;;  %v412_v17 = vrot.slane %v398_v15, %v404_v11 }
 0x138   : > { %v413_v18 = vcombine.low %v405_v16, %v412_v17 }
 0x13a   : > { %v420_v19 = vrot.slane %v413_v18, %v404_v11 }
 0x13c   : > { %426 = vst.msk [vmem:[%s183_s7] sm:$0xf] %vm424_vm0, %v420_v19 }
 0x13d   : > { %664 = shalt.err (!%p661_p0)
}
 0x13e   : > { %s665_s29 = scalar_lea.hbm %s440_s16, 64  ;;  %s669_s11 = scalar_lea.hbm %s930_s3, 64 }
 0x13f   : > { %p666_p5 = scmp.ne.s32.totalorder %s440_s16, %s665_s29  ;;  %p670_p2 = scmp.lt.s32.totalorder %s440_s16, %s930_s3 }
 0x140   : > { %p671_p4 = scmp.lt.s32.totalorder %s669_s11, %s665_s29 }
 0x141   : > { %p667_p6 = pnand %p666_p5, %p946_p11 }
 0x142   : > { %p672_p9 = por %p671_p4, %p670_p2 }
 0x143   : > { %p668_p7 = pneg %p667_p6 }
 0x145   : > { %p673_p1 = pnand %p672_p9, %p668_p7 }
 0x147   : > { %676 = shalt.err (!%p673_p1)
}
 0x148   : > { %542 = dma.vmem_to_hbm [thread:$0]  (%p946_p11), %s443_s12, 64, %s440_s16, %s428_s22  }
 0x149 PF: > { %p559_p3 = scmp.ge.s32.totalorder %s719_s20, 2  ;;  %s454_s26 = sand.u32 1, %s707_s17  }
 0x14a   : > { %p947_p10 = scmp.ne.s32.totalorder %s937_s4, 0  ;;  %s455_s5 = scalar_lea.sflag [#allocation4], %s454_s26 }
 0x14c   : > { %p553_p12 = pnand %p559_p3, %p947_p10 }
 0x14e   : > { %p554_p13 = pneg %p553_p12 }
 0x150   : > { %702 = dma.done.wait (%p554_p13), %s455_s5, 64  }
 0x151   : > { %704 = vsyncadd (%p554_p13), %s455_s5, 4294967232  ;;  %p18_p11 = scmp.ge.s32.totalorder %s818_s9, %s15_s14  ;;  %s948_s17 = smov %s711_s18 }
 0x152   : > { %s949_s18 = smov %s715_s19  ;;  %s950_s19 = smov %s838_s25 }
 0x153   : > { %s951_s20 = smov %s818_s9  ;;  %21 = sbr.rel (!%p18_p11) target bundleno = 12 (0xc), region = 77 }
 0x158 PF:  { %460 = vsyncpa [#allocation3], 1 }
 0x159   :  { %462 = vsyncpa [#allocation3 + $0x1], 1 }
 0x15a   :  { %463 = vsyncpa [#allocation6], 1 }
 0x15b   :  { %464 = vsyncpa [#allocation4], 1 }
 0x15c   :  { %466 = vsyncpa [#allocation4 + $0x1], 1 }

</bundles_post_ra>
